<compile_context>
chip_gen: v5e
topology: v5e:2x2
jax: 0.10.0
libtpu: 0.0.40
codegen_flags: <defaults>
</compile_context>

<pallas_src>
import jax
import jax.numpy as jnp
from jax.experimental import pallas as pl
from jax.experimental.pallas import tpu as pltpu


def _round_up(x, m):
    return ((x + m - 1) // m) * m


def _critic_kernel(x_ref, w1_ref, b1_ref, w2_ref, b2_ref, w3_ref, b3_ref,
                   out_ref):
    # x_ref: (TILE_B, S) in the matmul dtype (f32 or bf16); biases / w3 row
    # are f32; w1/w2 share the matmul dtype. All accumulation is f32.
    x = x_ref[...]
    h1 = jnp.tanh(
        jnp.dot(x, w1_ref[...], preferred_element_type=jnp.float32)
        + b1_ref[...])                                      # (TILE_B, H) f32
    h2 = jnp.tanh(
        jnp.dot(h1.astype(w2_ref.dtype), w2_ref[...],
                preferred_element_type=jnp.float32)
        + b2_ref[...])                                      # (TILE_B, H) f32
    # Final H -> 1 layer as a VPU multiply + lane reduction (a 1-column MXU
    # matmul would use a single MXU column); w3 is a (1, H) f32 row.
    v = jnp.sum(h2 * w3_ref[...], axis=-1, keepdims=True) + b3_ref[...]
    out_ref[...] = v.astype(out_ref.dtype)                  # (TILE_B, 1)


def critic_forward(state, params, *, tile_b=None, matmul_dtype=jnp.float32):
    """state: (B, state_size) float32 -> (B,) float32."""
    w1, b1, w2, b2, w3, b3 = params
    B, S = state.shape
    H = w1.shape[1]

    # --- batch tiling --------------------------------------------------------
    if tile_b is None:
        # Big tiles amortize the ~0.35 us per-grid-step overhead; with S=16 a
        # 2048-row f32 tile is only ~128 KiB so VMEM is never the constraint.
        tile_b = min(2048, _round_up(B, 8))
    tile_b = max(8, _round_up(tile_b, 8))    # sublane-aligned rows (f32: 8)
    num_tiles = pl.cdiv(B, tile_b)
    b_pad = num_tiles * tile_b
    if b_pad != B:                           # ragged last tile -> zero pad
        state = jnp.pad(state, ((0, b_pad - B), (0, 0)))

    # --- dtype plumbing ------------------------------------------------------
    # Only MXU operands are cast; biases / tanh / final reduce stay f32.
    x_in = state.astype(matmul_dtype)
    w1_in = w1.astype(matmul_dtype)
    w2_in = w2.astype(matmul_dtype)
    w3_row = w3.reshape(1, H).astype(jnp.float32)    # used on the VPU
    b1_in = b1.reshape(1, H).astype(jnp.float32)
    b2_in = b2.reshape(1, H).astype(jnp.float32)
    b3_in = b3.reshape(1, 1).astype(jnp.float32)

    # --- explicit VMEM budget (safe for v7x's smaller VMEM) ------------------
    in_item = jnp.dtype(matmul_dtype).itemsize
    vmem_bytes = (
        2 * tile_b * S * in_item        # double-buffered state stream
        + 2 * tile_b * 4                # double-buffered output tile
        + (S * H + H * H) * in_item     # resident weight matrices
        + (3 * H + 2) * 4               # biases + w3 row + b3
        + 4 * tile_b * H * 4            # h1/h2 intermediate headroom
    )
    vmem_limit = int(min(32 * 1024 * 1024, max(8 * 1024 * 1024, 8 * vmem_bytes)))

    cost = pl.CostEstimate(
        flops=2 * b_pad * (S * H + H * H + H),
        transcendentals=2 * b_pad * H,
        bytes_accessed=(b_pad * S * in_item + b_pad * 4
                        + (S * H + H * H) * in_item + (3 * H + 2) * 4),
    )

    # Weights/biases: constant block index -> resident in VMEM across the grid.
    resident = lambda a: pl.BlockSpec(a.shape, lambda i: (0, 0))

    out = pl.pallas_call(
        _critic_kernel,
        out_shape=jax.ShapeDtypeStruct((b_pad, 1), jnp.float32),
        grid=(num_tiles,),
        in_specs=[
            pl.BlockSpec((tile_b, S), lambda i: (i, 0)),   # streamed per tile
            resident(w1_in), resident(b1_in),
            resident(w2_in), resident(b2_in),
            resident(w3_row), resident(b3_in),
        ],
        out_specs=pl.BlockSpec((tile_b, 1), lambda i: (i, 0)),
        compiler_params=pltpu.CompilerParams(
            dimension_semantics=("parallel",),
            vmem_limit_bytes=vmem_limit,
        ),
        cost_estimate=cost,
    )(x_in, w1_in, b1_in, w2_in, b2_in, w3_row, b3_in)

    return out[:B, 0]   # drop batch padding + squeeze(dim=1)


def init_critic_params(key, state_size, hidden_size):
    """Deterministic synthetic init (shapes match the nn.Linear layers)."""
    k1, k2, k3, k4, k5, k6 = jax.random.split(key, 6)
    # Weights stored as (in, out); biases kept 2D (1, out) for TPU layout.
    w1 = jax.random.normal(k1, (state_size, hidden_size), jnp.float32) * 0.1
    b1 = jax.random.normal(k2, (1, hidden_size), jnp.float32) * 0.1
    w2 = jax.random.normal(k3, (hidden_size, hidden_size), jnp.float32) * 0.1
    b2 = jax.random.normal(k4, (1, hidden_size), jnp.float32) * 0.1
    w3 = jax.random.normal(k5, (hidden_size, 1), jnp.float32) * 0.1
    b3 = jax.random.normal(k6, (1, 1), jnp.float32) * 0.1
    return (w1, b1, w2, b2, w3, b3)


def _reference(state, params):
    w1, b1, w2, b2, w3, b3 = params
    h1 = jnp.tanh(state @ w1 + b1)
    h2 = jnp.tanh(h1 @ w2 + b2)
    return (h2 @ w3 + b3)[:, 0]


if __name__ == "__main__":
    key = jax.random.PRNGKey(0)
    batch, state_size, hidden_size = 8, 16, 32
    # TODO(synk): hidden_size=32 fills only 32 of 128 lanes per vreg; the model
    # config (not the kernel) would need hidden as a multiple of 128 to fix it.

    k_x, k_p = jax.random.split(key)
    state = jax.random.normal(k_x, (batch, state_size), jnp.float32)
    params = init_critic_params(k_p, state_size, hidden_size)
    ref = _reference(state, params)

    # 1) f32 path (exact match to the reference math).
    value = jax.block_until_ready(critic_forward(state, params))
    assert value.shape == (batch,)
    assert jnp.allclose(value, ref, atol=1e-5, rtol=1e-5)

    # 2) bf16-matmul path (v6e/v7x recommendation; f32 accumulate + f32 tanh).
    value_bf16 = jax.block_until_ready(
        critic_forward(state, params, matmul_dtype=jnp.bfloat16))
    assert value_bf16.shape == (batch,)
    assert jnp.allclose(value_bf16, ref, atol=5e-2, rtol=5e-2)

    # 3) multi-tile + ragged batch (exercises the grid and the padding path).
    big_b = 300
    big_state = jax.random.normal(jax.random.PRNGKey(1), (big_b, state_size),
                                  jnp.float32)
    big_val = jax.block_until_ready(
        critic_forward(big_state, params, tile_b=128))
    assert big_val.shape == (big_b,)
    assert jnp.allclose(big_val, _reference(big_state, params),
                        atol=1e-5, rtol=1e-5)

    print("KERNEL_OK")
</pallas_src>

<mosaic_0001>
module attributes {stable_mosaic.version = 11 : i64} {
  func.func @_critic_kernel(%arg0: i32, %arg1: memref<8x16xf32, #tpu.memory_space<vmem>>, %arg2: memref<16x32xf32, #tpu.memory_space<vmem>>, %arg3: memref<1x32xf32, #tpu.memory_space<vmem>>, %arg4: memref<32x32xf32, #tpu.memory_space<vmem>>, %arg5: memref<1x32xf32, #tpu.memory_space<vmem>>, %arg6: memref<1x32xf32, #tpu.memory_space<vmem>>, %arg7: memref<1x1xf32, #tpu.memory_space<vmem>>, %arg8: memref<8x1xf32, #tpu.memory_space<vmem>>) attributes {dimension_semantics = [#tpu.dimension_semantics<parallel>], iteration_bounds = array<i64: 1>, scalar_prefetch = 0 : i64, scratch_operands = 0 : i64, tpu.core_type = #tpu.core_type<tc>, window_params = [{transform_indices = @transform_0, window_bounds = array<i64: 8, 16>}, {pipeline_mode = #tpu.pipeline_mode<synchronous>, transform_indices = @transform_1, window_bounds = array<i64: 16, 32>}, {pipeline_mode = #tpu.pipeline_mode<synchronous>, transform_indices = @transform_2, window_bounds = array<i64: 1, 32>}, {pipeline_mode = #tpu.pipeline_mode<synchronous>, transform_indices = @transform_3, window_bounds = array<i64: 32, 32>}, {pipeline_mode = #tpu.pipeline_mode<synchronous>, transform_indices = @transform_4, window_bounds = array<i64: 1, 32>}, {pipeline_mode = #tpu.pipeline_mode<synchronous>, transform_indices = @transform_5, window_bounds = array<i64: 1, 32>}, {pipeline_mode = #tpu.pipeline_mode<synchronous>, transform_indices = @transform_6, window_bounds = array<i64: 1, 1>}, {transform_indices = @transform_7, window_bounds = array<i64: 8, 1>}]} {
    %c0 = arith.constant 0 : index
    %c0_0 = arith.constant 0 : index
    %0 = vector.load %arg1[%c0, %c0_0] : memref<8x16xf32, #tpu.memory_space<vmem>>, vector<8x16xf32>
    %c0_1 = arith.constant 0 : index
    %c0_2 = arith.constant 0 : index
    %1 = vector.load %arg2[%c0_1, %c0_2] : memref<16x32xf32, #tpu.memory_space<vmem>>, vector<16x32xf32>
    %cst = arith.constant dense<0.000000e+00> : vector<8x32xf32>
    %2 = tpu.matmul %0, %1, %cst {dimension_numbers = #tpu.dot_dimension_numbers<[1], [0], [0], [1], [0, 0, 1, 1], [], []>} : vector<8x16xf32>, vector<16x32xf32>, vector<8x32xf32> -> vector<8x32xf32>
    %c0_3 = arith.constant 0 : index
    %c0_4 = arith.constant 0 : index
    %3 = vector.load %arg3[%c0_3, %c0_4] : memref<1x32xf32, #tpu.memory_space<vmem>>, vector<1x32xf32>
    %4 = vector.broadcast %3 : vector<1x32xf32> to vector<8x32xf32>
    %5 = arith.addf %2, %4 : vector<8x32xf32>
    %6 = math.tanh %5 : vector<8x32xf32>
    %c0_5 = arith.constant 0 : index
    %c0_6 = arith.constant 0 : index
    %7 = vector.load %arg4[%c0_5, %c0_6] : memref<32x32xf32, #tpu.memory_space<vmem>>, vector<32x32xf32>
    %cst_7 = arith.constant dense<0.000000e+00> : vector<8x32xf32>
    %8 = tpu.matmul %6, %7, %cst_7 {dimension_numbers = #tpu.dot_dimension_numbers<[1], [0], [0], [1], [0, 0, 1, 1], [], []>} : vector<8x32xf32>, vector<32x32xf32>, vector<8x32xf32> -> vector<8x32xf32>
    %c0_8 = arith.constant 0 : index
    %c0_9 = arith.constant 0 : index
    %9 = vector.load %arg5[%c0_8, %c0_9] : memref<1x32xf32, #tpu.memory_space<vmem>>, vector<1x32xf32>
    %10 = vector.broadcast %9 : vector<1x32xf32> to vector<8x32xf32>
    %11 = arith.addf %8, %10 : vector<8x32xf32>
    %12 = math.tanh %11 : vector<8x32xf32>
    %c0_10 = arith.constant 0 : index
    %c0_11 = arith.constant 0 : index
    %13 = vector.load %arg6[%c0_10, %c0_11] : memref<1x32xf32, #tpu.memory_space<vmem>>, vector<1x32xf32>
    %14 = vector.broadcast %13 : vector<1x32xf32> to vector<8x32xf32>
    %15 = arith.mulf %12, %14 : vector<8x32xf32>
    %cst_12 = arith.constant dense<0.000000e+00> : vector<8xf32>
    %16 = vector.multi_reduction <add>, %15, %cst_12 [1] : vector<8x32xf32> to vector<8xf32>
    %17 = vector.shape_cast %16 : vector<8xf32> to vector<8x1xf32>
    %c0_13 = arith.constant 0 : index
    %c0_14 = arith.constant 0 : index
    %18 = vector.load %arg7[%c0_13, %c0_14] : memref<1x1xf32, #tpu.memory_space<vmem>>, vector<1x1xf32>
    %19 = vector.broadcast %18 : vector<1x1xf32> to vector<8x1xf32>
    %20 = arith.addf %17, %19 : vector<8x1xf32>
    %c0_15 = arith.constant 0 : index
    %c0_16 = arith.constant 0 : index
    %21 = vector.load %arg8[%c0_15, %c0_16] : memref<8x1xf32, #tpu.memory_space<vmem>>, vector<8x1xf32>
    tpu.vector_store %arg8[%c0_15, %c0_16], %20 {strides = array<i32>} : memref<8x1xf32, #tpu.memory_space<vmem>>, vector<8x1xf32>,
    return
  }
  func.func @transform_0(%arg0: i32) -> (i32, i32) {
    %c0_i32 = arith.constant 0 : i32
    %c0_i32_0 = arith.constant 0 : i32
    return %arg0, %c0_i32 : i32, i32
  }
  func.func @transform_1(%arg0: i32) -> (i32, i32) {
    %c0_i32 = arith.constant 0 : i32
    %c0_i32_0 = arith.constant 0 : i32
    %c0_i32_1 = arith.constant 0 : i32
    return %c0_i32, %c0_i32_0 : i32, i32
  }
  func.func @transform_2(%arg0: i32) -> (i32, i32) {
    %c0_i32 = arith.constant 0 : i32
    %c0_i32_0 = arith.constant 0 : i32
    %c0_i32_1 = arith.constant 0 : i32
    return %c0_i32, %c0_i32_0 : i32, i32
  }
  func.func @transform_3(%arg0: i32) -> (i32, i32) {
    %c0_i32 = arith.constant 0 : i32
    %c0_i32_0 = arith.constant 0 : i32
    %c0_i32_1 = arith.constant 0 : i32
    return %c0_i32, %c0_i32_0 : i32, i32
  }
  func.func @transform_4(%arg0: i32) -> (i32, i32) {
    %c0_i32 = arith.constant 0 : i32
    %c0_i32_0 = arith.constant 0 : i32
    %c0_i32_1 = arith.constant 0 : i32
    return %c0_i32, %c0_i32_0 : i32, i32
  }
  func.func @transform_5(%arg0: i32) -> (i32, i32) {
    %c0_i32 = arith.constant 0 : i32
    %c0_i32_0 = arith.constant 0 : i32
    %c0_i32_1 = arith.constant 0 : i32
    return %c0_i32, %c0_i32_0 : i32, i32
  }
  func.func @transform_6(%arg0: i32) -> (i32, i32) {
    %c0_i32 = arith.constant 0 : i32
    %c0_i32_0 = arith.constant 0 : i32
    %c0_i32_1 = arith.constant 0 : i32
    return %c0_i32, %c0_i32_0 : i32, i32
  }
  func.func @transform_7(%arg0: i32) -> (i32, i32) {
    %c0_i32 = arith.constant 0 : i32
    %c0_i32_0 = arith.constant 0 : i32
    return %arg0, %c0_i32 : i32, i32
  }
}

</mosaic_0001>

<bundles_post_ra>
// kernel: tpu_custom_call.1
= control target key start
LH: loop header
LB: loop body
LE: loop exit
PB: predicated region body
PF: predicated region fallthrough
CT: control target
= control target key end

     0   :  { %s319_s0 = inlined_call_operand.hbm [shape: f32[8,16], index: 0, kind: input, shape index: {}]   ;;  %s320_s1 = inlined_call_operand.hbm [shape: f32[16,32], index: 1, kind: input, shape index: {}]   ;;  %s321_s2 = inlined_call_operand.vmem [shape: f32[1,32], index: 2, kind: input, shape index: {}]   ;;  %s322_s3 = inlined_call_operand.hbm [shape: f32[32,32], index: 3, kind: input, shape index: {}]   ;;  %s323_s4 = inlined_call_operand.vmem [shape: f32[1,32], index: 4, kind: input, shape index: {}]   ;;  %s324_s5 = inlined_call_operand.vmem [shape: f32[1,32], index: 5, kind: input, shape index: {}]   ;;  %s325_s6 = inlined_call_operand.<no memory space> [shape: f32[1,1], index: 6, kind: input, shape index: {}]   ;;  %s326_s7 = inlined_call_operand.vmem [shape: f32[8,1], index: 7, kind: output, shape index: {}]  }
   0x1   :  { %v12_v0 = vstv %s325_s6 }
   0x2   :  { %13 = vst [vmem:[#allocation2] sm:$0x1] %v12_v0 }
   0x3   :  { %14 = vsyncpa [#allocation4], 0 }
   0x4   :  { %15 = vsyncpa [#allocation6], 0  ;;  %s31_s28 = sshll.u32 %s320_s1, 4  ;;  %s250_s29 = smov [#allocation5]   ;;  %s32_s28 = int_to_ptr.hbm [resolvable:$true] %s31_s28 }
   0x5   :  { %s33_s30 = sshll.u32 %s250_s29, 4  ;;  %s21_s10 = sshll.u32 %s319_s0, 4  ;;  %s34_s30 = int_to_ptr.vmem [resolvable:$true] %s33_s30  ;;  %s22_s10 = int_to_ptr.hbm [resolvable:$true] %s21_s10 }
   0x6   :  { %s251_s11 = smov 128   ;;  %s252_s12 = smov 8  }
   0x7   :  { %39 = dma.hbm_to_vmem [thread:$0]  %s32_s28, 256, %s34_s30, [#allocation6], %s251_s11, %s251_s11, %s252_s12  }
   0x8   :  { %s253_s6 = smov [#allocation3]   ;;  %s46_s16 = sshll.u32 %s322_s3, 4  ;;  %s47_s16 = int_to_ptr.hbm [resolvable:$true] %s46_s16 }
   0x9   :  { %s23_s13 = sshll.u32 %s253_s6, 4  ;;  %s254_s1 = smov [#allocation7]   ;;  %s24_s13 = int_to_ptr.vmem [resolvable:$true] %s23_s13 }
   0xa   :  { %26 = dma.hbm_to_vmem [thread:$0]  %s22_s10, 128, %s24_s13, [#allocation4]  }
   0xb   :  { %s48_s17 = sshll.u32 %s254_s1, 4  ;;  %s49_s17 = int_to_ptr.vmem [resolvable:$true] %s48_s17 }
   0xc   :  { %54 = dma.hbm_to_vmem [thread:$0]  %s47_s16, 512, %s49_s17, [#allocation6], %s251_s11, %s251_s11, %s252_s12  }
   0xd   :  { %246 = dma.done.wait [#allocation4], 128  }
   0xe   :  { %247 = vsyncadd [#allocation4], 4294967168 }
   0xf   :  { %248 = dma.done.wait [#allocation6], 768  }
  0x10   :  { %249 = vsyncadd [#allocation6], 4294966528  ;;  %v75_v1 = vld [vmem:[#allocation5 + $0x8] sm:$0xff]  ;;  %v74_v2 = vld [vmem:[#allocation5] sm:$0xff]  ;;  %vm80_vm0 = vcmask 130048   ;;  %vm113_vm1 = vcmask 261120  }
  0x11   :  { %98 = vmatpush.msra.mxu0 %v75_v1  ;;  %v73_v3 = vld [vmem:[#allocation3] sm:$0xff]  ;;  %v108_v4 = vld [vmem:[#allocation7 + $0x18] sm:$0xff]  ;;  %v107_v5 = vld [vmem:[#allocation7 + $0x10] sm:$0xff]  ;;  %vm151_vm2 = vcmask 7168  }
  0x12   :  { %129 = vmatpush.msra.mxu1 %v108_v4  ;;  %v106_v6 = vld [vmem:[#allocation7 + $0x8] sm:$0xff]  ;;  %v105_v7 = vld [vmem:[#allocation7] sm:$0xff] }
  0x13   :  { %99 = vmatpush.msra.mxu0 %v74_v2  ;;  %v166_v8 = vld [vmem:[%s321_s2] ss:$0 sm:$0xff] }
  0x14   :  { %159 = vmatmul.msk.f32.vlgmr.msra.gmra.mxu0 %vm80_vm0, %v73_v3  ;;  %130 = vmatpush.msra.mxu1 %v107_v5  ;;  %v167_v12 = vld [vmem:[%s323_s4] ss:$0 sm:$0xff] }
  0x15   :  { %v168_v15 = vld [vmem:[%s324_s5] ss:$0 sm:$0xff] }
  0x16   :  { %131 = vmatpush.msra.mxu1 %v106_v6  ;;  %v169_v19 = vld [vmem:[#allocation2] ss:$0 sm:$0xff] }
  0x18   :  { %132 = vmatpush.msra.mxu1 %v105_v7 }
  0x91   :  { %v101_v9 = vpop.f32.mrf.mxu0 }
  0x92   :  { %v102_v10 = vadd.f32 %v166_v8, %v101_v9 }
  0x94   :  { %170 = vtanh.f32 %v102_v10 }
  0x9a   :  { %v171_v11 = vpop.eup %170 }
  0x9b   :  { %160 = vmatmul.msk.f32.vlgmr.msra.gmra.mxu1 %vm113_vm1, %v171_v11 }
 0x118   :  { %v134_v13 = vpop.f32.mrf.mxu1 }
 0x119   :  { %v135_v14 = vadd.f32 %v167_v12, %v134_v13 }
 0x11b   :  { %172 = vtanh.f32 %v135_v14 }
 0x121   :  { %v173_v16 = vpop.eup %172 }
 0x122   :  { %v142_v17 = vmul.f32 %v173_v16, %v168_v15 }
 0x124   :  { %v143_v18 = vsel %vm113_vm1, %v142_v17, 0.0 }
 0x125   :  { %144 = vadd.xlane.f32.xlu0 %v143_v18 }
 0x198   :  { %v145_v20 = vpop.xlane.xlu0 %144 }
 0x199   :  { %v150_v21 = vadd.f32 %v169_v19, %v145_v20 }
 0x19b   :  { %152 = vst.msk [vmem:[%s326_s7] sm:$0xff] %vm151_vm2, %v150_v21 }
 0x19c   :  { %157 = vsyncpa [#allocation4], 1 }
 0x19d   :  { %158 = vsyncpa [#allocation6], 1 }

</bundles_post_ra>
